<compile_context>
chip_gen: v7x
topology: tpu7x:2x2x1
jax: 0.10.0
libtpu: 0.0.40
codegen_flags: <defaults>
</compile_context>

<pallas_src>
import jax
import jax.numpy as jnp
from jax.experimental import pallas as pl
from jax.experimental.pallas import tpu as pltpu


def _round_up(a: int, b: int) -> int:
    return (a + b - 1) // b * b


def _itemsize(dt) -> int:
    return jnp.dtype(dt).itemsize


# --------------------------------------------------------------------------- kernel --
def _patch_embed_kernel(x_ref, w_ref, b_ref, o_ref):
    # x_ref: (tm, K_pad)  patch tile (compute dtype)
    # w_ref: (K_pad, te)  resident projection weight (compute dtype)
    # b_ref: (1, te)      resident bias (f32)
    # o_ref: (tm, te)     output tile
    acc = jnp.dot(x_ref[...], w_ref[...], preferred_element_type=jnp.float32)
    o_ref[...] = (acc + b_ref[...]).astype(o_ref.dtype)


# --------------------------------------------- pl.Buffered(1) (single-buffer) probe --
_SINGLE_BUFFER_OK = None


def _probe_copy_kernel(x_ref, o_ref):
    o_ref[...] = x_ref[...]


def _single_buffer_supported() -> bool:
    """Whether this jax build lowers pl.Buffered(1) (single-buffered resident blocks)."""
    global _SINGLE_BUFFER_OK
    if _SINGLE_BUFFER_OK is None:
        try:
            fn = pl.pallas_call(
                _probe_copy_kernel,
                out_shape=jax.ShapeDtypeStruct((8, 128), jnp.float32),
                grid_spec=pltpu.PrefetchScalarGridSpec(
                    num_scalar_prefetch=0,
                    grid=(1,),
                    in_specs=[pl.BlockSpec((8, 128), lambda i: (0, 0),
                                           pipeline_mode=pl.Buffered(1))],
                    out_specs=pl.BlockSpec((8, 128), lambda i: (0, 0)),
                ),
            )
            jax.block_until_ready(fn(jnp.zeros((8, 128), jnp.float32)))
            _SINGLE_BUFFER_OK = True
        except Exception:
            _SINGLE_BUFFER_OK = False   # older jax: keep default double-buffering
    return _SINGLE_BUFFER_OK


# ----------------------------------------------------------- per-generation defaults --
def _generation_defaults():
    kind = ""
    try:
        kind = jax.devices()[0].device_kind.lower()
    except Exception:
        pass
    older = any(v in kind for v in ("v2", "v3", "v4", "v5"))
    # v6e/v7x MXU is 2x256x256 -> pad E to 256; v5e's is 128x128 and it is the most
    # memory-bound (820 GB/s HBM, 16 MiB default scoped VMEM) -> keep 128 / 512-row tiles.
    e_align = 128 if older else 256
    tm_target = 512 if older else 1024
    return e_align, tm_target


# ----------------------------------------------------------------------- public API --
def make_patch_embedding(weight, bias, patch_size, *,
                         compute_dtype=jnp.bfloat16, out_dtype=None,
                         tm_target=None, vmem_budget_bytes=40 * 2**20):
    """Build a patch-embedding forward fn with the projection weight prepped ONCE.

    weight: (E, C, P, P) Conv2d weight; bias: (E,) or None.
    Returned fn maps x (B, C, H, W) -> (B, num_patches, E), matching PyTorch
    PatchEmbedding.forward.  compute_dtype=jnp.float32 gives exact f32 parity;
    out_dtype=jnp.bfloat16 halves output store traffic if downstream accepts it
    (default: same dtype as x, preserving the module's semantics).
    """
    E, C, P0, P1 = weight.shape
    P = patch_size
    assert P0 == P and P1 == P
    K = C * P * P

    e_align, tm_default = _generation_defaults()
    if tm_target is None:
        tm_target = tm_default

    K_pad = _round_up(max(K, 128), 128)
    E_pad = _round_up(max(E, e_align), e_align)
    cbytes = _itemsize(compute_dtype)

    # Stream the weight in E tiles only when it is too big to sit fully resident
    # (v7x: 64 MiB/TC, and "parallel" M-sharding duplicates the resident copy per core).
    if K_pad * E_pad * cbytes <= 24 * 2**20:
        te = E_pad
    else:
        te = 2 * e_align
        E_pad = _round_up(E_pad, te)
    grid_e = E_pad // te

    single_buffer = (grid_e == 1) and _single_buffer_supported()

    # ---- weight / bias prep, hoisted out of the per-call path (done once) ----
    w_mat = jnp.asarray(weight).reshape(E, K).T.astype(compute_dtype)      # (K, E)
    w_p = jnp.pad(w_mat, ((0, K_pad - K), (0, E_pad - E)))
    if bias is None:
        b_p = jnp.zeros((1, E_pad), jnp.float32)
    else:
        b_p = jnp.pad(jnp.asarray(bias).astype(jnp.float32).reshape(1, E),
                      ((0, 0), (0, E_pad - E)))

    def apply(x):
        B, C_in, H, W = x.shape
        assert C_in == C and H % P == 0 and W % P == 0
        Hp, Wp = H // P, W // P
        num_patches = Hp * Wp
        M = B * num_patches
        odtype = jnp.dtype(x.dtype if out_dtype is None else out_dtype)

        # ---- im2col: one fused XLA cast+transpose+pad pass (see TODO at top) ----
        xp = x.astype(compute_dtype).reshape(B, C, Hp, P, Wp, P)
        xp = jnp.transpose(xp, (0, 2, 4, 1, 3, 5))            # (B, Hp, Wp, C, P, P)
        patches = xp.reshape(M, K)

        # ---- M tile: large multiple-of-256 steady path, 16-aligned tiny path ----
        tm = _round_up(M, 16) if M <= tm_target else tm_target
        nbuf_w = 1 if single_buffer else 2

        def footprint(tm_):
            return (2 * tm_ * K_pad * cbytes              # double-buffered patch tiles
                    + nbuf_w * K_pad * te * cbytes         # resident weight
                    + nbuf_w * te * 4                      # resident bias (f32)
                    + 2 * tm_ * te * odtype.itemsize)      # double-buffered output tiles

        while footprint(tm) > vmem_budget_bytes and tm > 256:
            tm //= 2
        M_pad = _round_up(M, tm)
        grid_m = M_pad // tm
        vmem_limit = int(min(64 * 2**20, max(2 * footprint(tm), 32 * 2**20)))

        patches_p = jnp.pad(patches, ((0, M_pad - M), (0, K_pad - K)))

        resident_kw = {"pipeline_mode": pl.Buffered(1)} if single_buffer else {}
        out = pl.pallas_call(
            _patch_embed_kernel,
            out_shape=jax.ShapeDtypeStruct((M_pad, E_pad), odtype),
            grid_spec=pltpu.PrefetchScalarGridSpec(
                num_scalar_prefetch=0,
                grid=(grid_m, grid_e),
                in_specs=[
                    pl.BlockSpec((tm, K_pad), lambda i, j: (i, 0)),
                    pl.BlockSpec((K_pad, te), lambda i, j: (0, j), **resident_kw),
                    pl.BlockSpec((1, te), lambda i, j: (0, j), **resident_kw),
                ],
                out_specs=pl.BlockSpec((tm, te), lambda i, j: (i, j)),
            ),
            compiler_params=pltpu.CompilerParams(
                dimension_semantics=("parallel", "parallel"),
                vmem_limit_bytes=vmem_limit),
        )(patches_p, w_p, b_p)

        return out[:M, :E].reshape(B, num_patches, E)

    return jax.jit(apply)


def patch_embedding(x, weight, bias, patch_size, *, compute_dtype=jnp.bfloat16,
                    out_dtype=None, tm_target=None):
    """One-shot convenience wrapper (prefer make_patch_embedding to hoist weight prep)."""
    return make_patch_embedding(weight, bias, patch_size, compute_dtype=compute_dtype,
                                out_dtype=out_dtype, tm_target=tm_target)(x)


if __name__ == "__main__":
    # Small config consistent with the module: image 16x16, patch 4, 4 channels,
    # embed_dim 32  ->  num_patches = (16 // 4) ** 2 = 16.
    B, C, H, W = 2, 4, 16, 16
    P = 4
    E = 32

    key = jax.random.PRNGKey(0)
    kx, kw, kb = jax.random.split(key, 3)
    x = jax.random.normal(kx, (B, C, H, W), dtype=jnp.float32)
    weight = jax.random.normal(kw, (E, C, P, P), dtype=jnp.float32) * 0.02
    bias = jax.random.normal(kb, (E,), dtype=jnp.float32) * 0.02

    embed = make_patch_embedding(weight, bias, P)     # weight prep hoisted (done once)
    out = jax.block_until_ready(embed(x))

    # Reference: XLA conv with nn.Conv2d semantics.  Tolerance loosened because the
    # kernel streams bf16 (f32 accumulation); pass compute_dtype=jnp.float32 for parity.
    ref = jax.lax.conv_general_dilated(
        x, weight, window_strides=(P, P), padding="VALID",
        dimension_numbers=("NCHW", "OIHW", "NCHW")) + bias[None, :, None, None]
    ref = ref.reshape(B, E, -1).transpose(0, 2, 1)

    assert out.shape == (B, (H // P) * (W // P), E)
    assert out.dtype == x.dtype
    assert jnp.allclose(out, ref, atol=2e-2, rtol=2e-2)

    print("KERNEL_OK")
</pallas_src>

<mosaic_0001>
module attributes {stable_mosaic.version = 11 : i64} {
  func.func @_probe_copy_kernel(%arg0: i32, %arg1: memref<8x128xf32, #tpu.memory_space<vmem>>, %arg2: memref<8x128xf32, #tpu.memory_space<vmem>>) attributes {dimension_semantics = [#tpu.dimension_semantics<arbitrary>], iteration_bounds = array<i64: 1>, scalar_prefetch = 0 : i64, scratch_operands = 0 : i64, tpu.core_type = #tpu.core_type<tc>, window_params = [{pipeline_mode = #tpu.pipeline_mode<synchronous>, transform_indices = @transform_0, window_bounds = array<i64: 8, 128>}, {pipeline_mode = #tpu.pipeline_mode<synchronous>, transform_indices = @transform_1, window_bounds = array<i64: 8, 128>}]} {
    %c0 = arith.constant 0 : index
    %c0_0 = arith.constant 0 : index
    %0 = vector.load %arg1[%c0, %c0_0] : memref<8x128xf32, #tpu.memory_space<vmem>>, vector<8x128xf32>
    %c0_1 = arith.constant 0 : index
    %c0_2 = arith.constant 0 : index
    %1 = vector.load %arg2[%c0_1, %c0_2] : memref<8x128xf32, #tpu.memory_space<vmem>>, vector<8x128xf32>
    tpu.vector_store %arg2[%c0_1, %c0_2], %0 {strides = array<i32>} : memref<8x128xf32, #tpu.memory_space<vmem>>, vector<8x128xf32>,
    return
  }
  func.func @transform_0(%arg0: i32) -> (i32, i32) {
    %c0_i32 = arith.constant 0 : i32
    %c0_i32_0 = arith.constant 0 : i32
    %c0_i32_1 = arith.constant 0 : i32
    return %c0_i32, %c0_i32_0 : i32, i32
  }
  func.func @transform_1(%arg0: i32) -> (i32, i32) {
    %c0_i32 = arith.constant 0 : i32
    %c0_i32_0 = arith.constant 0 : i32
    %c0_i32_1 = arith.constant 0 : i32
    return %c0_i32, %c0_i32_0 : i32, i32
  }
}

module attributes {stable_mosaic.version = 11 : i64} {
  func.func @_patch_embed_kernel(%arg0: i32, %arg1: i32, %arg2: memref<32x128xbf16, #tpu.memory_space<vmem>>, %arg3: memref<128x256xbf16, #tpu.memory_space<vmem>>, %arg4: memref<1x256xf32, #tpu.memory_space<vmem>>, %arg5: memref<32x256xf32, #tpu.memory_space<vmem>>) attributes {dimension_semantics = [#tpu.dimension_semantics<parallel>, #tpu.dimension_semantics<parallel>], iteration_bounds = array<i64: 1, 1>, scalar_prefetch = 0 : i64, scratch_operands = 0 : i64, tpu.core_type = #tpu.core_type<tc>, window_params = [{transform_indices = @transform_0, window_bounds = array<i64: 32, 128>}, {transform_indices = @transform_1, window_bounds = array<i64: 128, 256>}, {transform_indices = @transform_2, window_bounds = array<i64: 1, 256>}, {transform_indices = @transform_3, window_bounds = array<i64: 32, 256>}]} {
    %c0 = arith.constant 0 : index
    %c0_0 = arith.constant 0 : index
    %0 = vector.load %arg2[%c0, %c0_0] : memref<32x128xbf16, #tpu.memory_space<vmem>>, vector<32x128xbf16>
    %c0_1 = arith.constant 0 : index
    %c0_2 = arith.constant 0 : index
    %1 = vector.load %arg3[%c0_1, %c0_2] : memref<128x256xbf16, #tpu.memory_space<vmem>>, vector<128x256xbf16>
    %cst = arith.constant dense<0.000000e+00> : vector<32x256xf32>
    %2 = tpu.matmul %0, %1, %cst {dimension_numbers = #tpu.dot_dimension_numbers<[1], [0], [0], [1], [0, 0, 1, 1], [], []>} : vector<32x128xbf16>, vector<128x256xbf16>, vector<32x256xf32> -> vector<32x256xf32>
    %c0_3 = arith.constant 0 : index
    %c0_4 = arith.constant 0 : index
    %3 = vector.load %arg4[%c0_3, %c0_4] : memref<1x256xf32, #tpu.memory_space<vmem>>, vector<1x256xf32>
    %4 = vector.broadcast %3 : vector<1x256xf32> to vector<32x256xf32>
    %5 = arith.addf %2, %4 : vector<32x256xf32>
    %c0_5 = arith.constant 0 : index
    %c0_6 = arith.constant 0 : index
    %6 = vector.load %arg5[%c0_5, %c0_6] : memref<32x256xf32, #tpu.memory_space<vmem>>, vector<32x256xf32>
    tpu.vector_store %arg5[%c0_5, %c0_6], %5 {strides = array<i32>} : memref<32x256xf32, #tpu.memory_space<vmem>>, vector<32x256xf32>,
    return
  }
  func.func @transform_0(%arg0: i32, %arg1: i32) -> (i32, i32) {
    %c0_i32 = arith.constant 0 : i32
    %c0_i32_0 = arith.constant 0 : i32
    return %arg0, %c0_i32 : i32, i32
  }
  func.func @transform_1(%arg0: i32, %arg1: i32) -> (i32, i32) {
    %c0_i32 = arith.constant 0 : i32
    %c0_i32_0 = arith.constant 0 : i32
    return %c0_i32, %arg1 : i32, i32
  }
  func.func @transform_2(%arg0: i32, %arg1: i32) -> (i32, i32) {
    %c0_i32 = arith.constant 0 : i32
    %c0_i32_0 = arith.constant 0 : i32
    return %c0_i32, %arg1 : i32, i32
  }
  func.func @transform_3(%arg0: i32, %arg1: i32) -> (i32, i32) {
    %c0_i32 = arith.constant 0 : i32
    return %arg0, %arg1 : i32, i32
  }
}

</mosaic_0001>

<bundles_post_ra>
// kernel: tpu_custom_call.1
= control target key start
LH: loop header
LB: loop body
LE: loop exit
PB: predicated region body
PF: predicated region fallthrough
CT: control target
= control target key end

     0   :  { %6 = vsyncpa [#allocation3], 0  ;;  %s124_s0 = inlined_call_operand.hbm [shape: f32[8,128], index: 0, kind: input, shape index: {}]   ;;  %s125_s1 = inlined_call_operand.hbm [shape: f32[8,128], index: 1, kind: output, shape index: {}]  }
   0x1   :  { %7 = vsyncpa [#allocation4], 0  ;;  %s88_s6 = smov [#allocation2]   ;;  %s40_s10 = scalar_lea.hbm %s124_s0, 128 }
   0x2   :  { %s14_s7 = sshll.u32 %s88_s6, 4  ;;  %p41_p0 = scmp.ne.s32.totalorder %s124_s0, %s40_s10  ;;  %s15_s7 = int_to_ptr.vmem [resolvable:$true] %s14_s7 }
   0x3   :  { %p44_p1 = scmp.lt.u32.totalorder %s40_s10, %s124_s0 }
   0x5   :  { %p46_p2 = pnand %p44_p1, %p41_p0 }
   0x7   :  { %49 = shalt.err (!%p46_p2)
}
   0x8   :  { %s50_s15 = scalar_lea.vmem %s15_s7, 128  ;;  %p55_p4 = scmp.lt.s32.totalorder %s15_s7, %s15_s7 }
   0x9   :  { %p51_p3 = scmp.ne.s32.totalorder %s15_s7, %s50_s15  ;;  %p56_p5 = scmp.lt.s32.totalorder %s50_s15, %s50_s15 }
   0xb   :  { %p57_p6 = por %p56_p5, %p55_p4 }
   0xd   :  { %p58_p7 = pnand %p57_p6, %p51_p3 }
   0xf   :  { %61 = shalt.err (!%p58_p7)
}
  0x10   :  { %17 = dma.hbm_to_vmem [thread:$0]  %s124_s0, 128, %s15_s7, [#allocation3]  }
  0x11   :  { %84 = dma.done.wait [#allocation3], 128  }
  0x12   :  { %85 = vsyncadd [#allocation3], 4294967168  ;;  %s89_s18 = smov [#allocation5]   ;;  %v21_v0 = vld [vmem:[#allocation2] sm:$0xff] }
  0x13   :  { %s29_s19 = sshll.u32 %s89_s18, 4  ;;  %22 = vst [vmem:[#allocation5] sm:$0xff] %v21_v0  ;;  %s30_s19 = int_to_ptr.vmem [resolvable:$true] %s29_s19 }
  0x14   :  { %s62_s20 = scalar_lea.vmem %s30_s19, 128  ;;  %p67_p9 = scmp.lt.s32.totalorder %s30_s19, %s30_s19 }
  0x15   :  { %p63_p8 = scmp.ne.s32.totalorder %s30_s19, %s62_s20  ;;  %p68_p10 = scmp.lt.s32.totalorder %s62_s20, %s62_s20 }
  0x17   :  { %p69_p11 = por %p68_p10, %p67_p9 }
  0x19   :  { %p70_p12 = pnand %p69_p11, %p63_p8 }
  0x1b   :  { %73 = shalt.err (!%p70_p12)
}
  0x1c   :  { %s74_s23 = scalar_lea.hbm %s125_s1, 128 }
  0x1d   :  { %p75_p13 = scmp.ne.s32.totalorder %s125_s1, %s74_s23  ;;  %p78_p0 = scmp.lt.u32.totalorder %s74_s23, %s125_s1 }
  0x1f   :  { %p80_p1 = pnand %p78_p0, %p75_p13 }
  0x21   :  { %83 = shalt.err (!%p80_p1)
}
  0x22   :  { %32 = dma.vmem_to_hbm [thread:$0]  %s30_s19, 128, %s125_s1, [#allocation4]  }
  0x23   :  { %86 = dma.done.wait [#allocation4], 128  }
  0x24   :  { %87 = vsyncadd [#allocation4], 4294967168 }
  0x25   :  { %36 = vsyncpa [#allocation3], 1 }
  0x26   :  { %37 = vsyncpa [#allocation4], 1 }

// kernel: apply.1
= control target key start
LH: loop header
LB: loop body
LE: loop exit
PB: predicated region body
PF: predicated region fallthrough
CT: control target
= control target key end

     0   :  { %v265_v1 = vmov 0   ;;  %v37_v19 = vlaneseq  ;;  %s367_s1 = inlined_call_operand.vmem [shape: bf16[128,256], index: 1, kind: input, shape index: {}]   ;;  %s368_s0 = inlined_call_operand.vmem [shape: bf16[32,128], index: 0, kind: input, shape index: {}]   ;;  %s369_s2 = inlined_call_operand.vmem [shape: f32[1,256], index: 2, kind: input, shape index: {}]   ;;  %s370_s3 = inlined_call_operand.vmem [shape: f32[32,256], index: 3, kind: output, shape index: {}]  }
   0x1   :  { %v239_v0 = vld [vmem:[%s367_s1 + $0x4] ss:$8 sps:$4 sm:$0xff]   ;;  %171 = vmatprep.mubr.bf16.mxu0 %v265_v1  ;;  %181 = vmatprep.mubr.bf16.mxu1 %v265_v1  ;;  %v241_v2 = vld [vmem:[%s367_s1] ss:$8 sps:$4 sm:$0xff]   ;;  %v242_v3 = vld [vmem:[%s367_s1 + $0x14] ss:$8 sps:$4 sm:$0xff]  }
   0x2   :  { %139 = vmatprep.subr.bf16.mxu0 %v239_v0  ;;  %222 = vmatprep.subr.bf16.mxu1 %v239_v0  ;;  %v244_v4 = vld [vmem:[%s367_s1 + $0x10] ss:$8 sps:$4 sm:$0xff]   ;;  %v245_v5 = vld [vmem:[%s367_s1 + $0x24] ss:$8 sps:$4 sm:$0xff]   ;;  %v247_v6 = vld [vmem:[%s367_s1 + $0x20] ss:$8 sps:$4 sm:$0xff]  }
   0x3   :  { %140 = vmatpush1.bf16.msra.mxu0 %v241_v2  ;;  %230 = vmatpush1.bf16.msra.mxu1 %v241_v2  ;;  %v248_v7 = vld [vmem:[%s367_s1 + $0x34] ss:$8 sps:$4 sm:$0xff]   ;;  %v250_v8 = vld [vmem:[%s367_s1 + $0x30] ss:$8 sps:$4 sm:$0xff]   ;;  %v251_v9 = vld [vmem:[%s367_s1 + $0x44] ss:$8 sps:$4 sm:$0xff]  }
   0x4   :  { %141 = vmatprep.subr.bf16.mxu0 %v242_v3  ;;  %223 = vmatprep.subr.bf16.mxu1 %v242_v3  ;;  %v253_v10 = vld [vmem:[%s367_s1 + $0x40] ss:$8 sps:$4 sm:$0xff]   ;;  %v254_v11 = vld [vmem:[%s367_s1 + $0x54] ss:$8 sps:$4 sm:$0xff]   ;;  %v256_v12 = vld [vmem:[%s367_s1 + $0x50] ss:$8 sps:$4 sm:$0xff]  }
   0x5   :  { %v257_v13 = vld [vmem:[%s367_s1 + $0x64] ss:$8 sps:$4 sm:$0xff]   ;;  %v259_v14 = vld [vmem:[%s367_s1 + $0x60] ss:$8 sps:$4 sm:$0xff]   ;;  %v260_v15 = vld [vmem:[%s367_s1 + $0x74] ss:$8 sps:$4 sm:$0xff]  }
   0x6   :  { %v262_v16 = vld [vmem:[%s367_s1 + $0x70] ss:$8 sps:$4 sm:$0xff]   ;;  %v263_v17 = vld [vmem:[%s368_s0] sm:$0xff]   ;;  %v264_v18 = vld [vmem:[%s368_s0 + $0x8] sm:$0xff]   ;;  %v38_v20 = vshrl.u32 %v37_v19, 7 }
   0x7   :  { %142 = vmatpush1.bf16.msra.mxu0 %v244_v4  ;;  %231 = vmatpush1.bf16.msra.mxu1 %v244_v4  ;;  %v35_v22 = vld [vmem:[%s369_s2] sm:$0x3] }
   0x8   :  { %143 = vmatprep.subr.bf16.mxu0 %v245_v5  ;;  %224 = vmatprep.subr.bf16.mxu1 %v245_v5  ;;  %v39_v21 = vsub.s32 0, %v38_v20  ;;  %v43_v23 = vsub.s32 1, %v38_v20 }
   0xa   :  { %v40_v24 = vrot.slane %v35_v22, %v39_v21  ;;  %v44_v25 = vrot.slane %v35_v22, %v43_v23 }
   0xb   :  { %144 = vmatpush1.bf16.msra.mxu0 %v247_v6  ;;  %232 = vmatpush1.bf16.msra.mxu1 %v247_v6 }
   0xc   :  { %145 = vmatprep.subr.bf16.mxu0 %v248_v7  ;;  %225 = vmatprep.subr.bf16.mxu1 %v248_v7 }
   0xf   :  { %146 = vmatpush1.bf16.msra.mxu0 %v250_v8  ;;  %233 = vmatpush1.bf16.msra.mxu1 %v250_v8 }
  0x10   :  { %147 = vmatprep.subr.bf16.mxu0 %v251_v9  ;;  %226 = vmatprep.subr.bf16.mxu1 %v251_v9 }
  0x13   :  { %148 = vmatpush1.bf16.msra.mxu0 %v253_v10  ;;  %234 = vmatpush1.bf16.msra.mxu1 %v253_v10 }
  0x14   :  { %149 = vmatprep.subr.bf16.mxu0 %v254_v11  ;;  %227 = vmatprep.subr.bf16.mxu1 %v254_v11 }
  0x17   :  { %150 = vmatpush1.bf16.msra.mxu0 %v256_v12  ;;  %235 = vmatpush1.bf16.msra.mxu1 %v256_v12 }
  0x18   :  { %151 = vmatprep.subr.bf16.mxu0 %v257_v13  ;;  %228 = vmatprep.subr.bf16.mxu1 %v257_v13 }
  0x1b   :  { %152 = vmatpush1.bf16.msra.mxu0 %v259_v14  ;;  %236 = vmatpush1.bf16.msra.mxu1 %v259_v14 }
  0x1c   :  { %153 = vmatprep.subr.bf16.mxu0 %v260_v15  ;;  %229 = vmatprep.subr.bf16.mxu1 %v260_v15 }
  0x1f   :  { %154 = vmatpush1.bf16.msra.mxu0 %v262_v16  ;;  %237 = vmatpush1.bf16.msra.mxu1 %v262_v16 }
  0x22   :  { %172 = vmatmul.mubr.bf16.vlgmr.msra.gmra.mrb[0].mxu0 %v263_v17  ;;  %182 = vmatmul.mubr.bf16.vlgmr.msra.gmra.mrb[0].mxu1 %v264_v18 }
  0xf5   :  { %v173_v26 = vpop.f32.mrb[0].mxu0  ;;  %v183_v27 = vpop.f32.mrb[0].mxu1 }
  0xf6   :  { %v174_v28 = vadd.f32 %v173_v26, %v40_v24  ;;  %v184_v29 = vadd.f32 %v183_v27, %v40_v24  ;;  %v175_v30 = vpop.f32.mrb[1].mxu0  ;;  %v185_v31 = vpop.f32.mrb[1].mxu1 }
  0xf7   :  { %v176_v32 = vadd.f32 %v175_v30, %v44_v25  ;;  %v186_v33 = vadd.f32 %v185_v31, %v44_v25  ;;  %v177_v34 = vpop.f32.mrb[2].mxu0  ;;  %v187_v35 = vpop.f32.mrb[2].mxu1 }
  0xf8   :  { %192 = vst [vmem:[%s370_s3] sm:$0xff] %v174_v28  ;;  %196 = vst [vmem:[%s370_s3 + $0x20] sm:$0xff] %v184_v29  ;;  %v178_v36 = vadd.f32 %v177_v34, %v40_v24  ;;  %v188_v37 = vadd.f32 %v187_v35, %v40_v24  ;;  %v179_v38 = vpop.f32.mrb[3].mxu0  ;;  %v189_v39 = vpop.f32.mrb[3].mxu1 }
  0xf9   :  { %193 = vst [vmem:[%s370_s3 + $0x8] sm:$0xff] %v176_v32  ;;  %197 = vst [vmem:[%s370_s3 + $0x28] sm:$0xff] %v186_v33  ;;  %v180_v40 = vadd.f32 %v179_v38, %v44_v25  ;;  %v190_v41 = vadd.f32 %v189_v39, %v44_v25 }
  0xfa   :  { %194 = vst [vmem:[%s370_s3 + $0x10] sm:$0xff] %v178_v36  ;;  %198 = vst [vmem:[%s370_s3 + $0x30] sm:$0xff] %v188_v37 }
  0xfb   :  { %195 = vst [vmem:[%s370_s3 + $0x18] sm:$0xff] %v180_v40  ;;  %199 = vst [vmem:[%s370_s3 + $0x38] sm:$0xff] %v190_v41 }

</bundles_post_ra>
